<compile_context>
chip_gen: v6e
topology: v6e:2x2x1
jax: 0.10.0
libtpu: 0.0.40
codegen_flags: <defaults>
</compile_context>

<pallas_src>
from itertools import combinations

import numpy as np
import jax
import jax.numpy as jnp
from jax.experimental import pallas as pl
from jax.experimental.pallas import tpu as pltpu


_OUT_LANES = 128          # lane-dense chunk / output slab width
_MAX_TM = 1024            # row-tile cap (sublane axis)
_MAX_TC = 1024            # cell-tile cap (lane axis); bounds are tiny in VMEM


def _round_up(x: int, mult: int) -> int:
    return ((x + mult - 1) // mult) * mult


def _vmem_capacity_bytes() -> int:
    """Per-core VMEM capacity; conservative 64 MiB (v7x) fallback."""
    try:
        info = pltpu.get_tpu_info()
        for attr in ("vmem_capacity_bytes", "vmem_size_bytes", "vmem_bytes"):
            v = getattr(info, attr, None)
            if v:
                return int(v)
    except Exception:
        pass
    return 64 * 1024 * 1024


def _make_ehvi_kernel(q: int, m: int, tc: int):
    """Kernel body: chunked cell axis + DFS inclusion-exclusion, statically unrolled."""
    n_chunks = tc // _OUT_LANES

    def kernel(samples_ref, lower_ref, upper_ref, out_ref):
        # samples_ref: (TM, q*m)   lower_ref/upper_ref: (m, TC)   out_ref: (TM, 128)
        tm = samples_ref.shape[0]

        # Hoist every candidate point's objective column once per tile and
        # lane-broadcast it to the 128-wide chunk shape (done here, outside the
        # chunk loop, because JAX does not CSE broadcast_in_dim).
        cols = []
        for j in range(q):
            per_obj = []
            for d in range(m):
                col = samples_ref[:, j * m + d: j * m + d + 1]          # (TM, 1)
                per_obj.append(jnp.broadcast_to(col, (tm, _OUT_LANES)))  # (TM, 128)
            cols.append(per_obj)

        total = None
        # Statically-unrolled 128-lane chunks of the cell tile: the whole
        # lengths -> subset-min -> product -> signed-sum chain stays (TM, 128).
        for ck in range(n_chunks):
            lo = ck * _OUT_LANES
            # Per-objective bound rows for this chunk: sliced + sublane-broadcast
            # once, reused by all q candidate points and all subsets.
            u_d = [jnp.broadcast_to(upper_ref[d:d + 1, lo:lo + _OUT_LANES],
                                    (tm, _OUT_LANES)) for d in range(m)]
            l_d = [jnp.broadcast_to(lower_ref[d:d + 1, lo:lo + _OUT_LANES],
                                    (tm, _OUT_LANES)) for d in range(m)]

            # Clamped per-(point, objective) lengths for this chunk:
            #   L[j][d] = max(min(obj_{j,d}, upper_d) - lower_d, 0)   (TM, 128)
            lengths = [[jnp.maximum(jnp.minimum(cols[j][d], u_d[d]) - l_d[d], 0.0)
                        for d in range(m)]
                       for j in range(q)]

            # Depth-first inclusion-exclusion over all non-empty subsets.
            # Because x -> clamp(min(x, u) - l, 0) is monotone non-decreasing,
            # clamping the subset's min-vertex equals the min of per-point
            # clamped lengths, so each subset costs m minimums + (m-1) muls.
            # DFS keeps only the current prefix chain (<= q sets of m blocks)
            # live in the trace -> bounded vreg/VMEM pressure.
            # TODO(synk): for q >= 6 (>= 63 subsets) replace this static unroll
            # with a fori_loop over an SMEM subset/prefix-index table to keep
            # code size O(1).
            def dfs(last, prefix_mins, size, acc):
                area = prefix_mins[0]
                for d in range(1, m):
                    area = area * prefix_mins[d]
                if acc is None:            # first visited subset is a singleton: sign +1
                    acc = area
                elif size % 2 == 1:        # sign (-1)^(|S|+1)
                    acc = acc + area
                else:
                    acc = acc - area
                for nxt in range(last + 1, q):
                    ext = [jnp.minimum(prefix_mins[d], lengths[nxt][d])
                           for d in range(m)]
                    acc = dfs(nxt, ext, size + 1, acc)
                return acc

            chunk_acc = None
            for j0 in range(q):
                chunk_acc = dfs(j0, lengths[j0], 1, chunk_acc)

            total = chunk_acc if total is None else total + chunk_acc

        out_ref[...] = total

    return kernel


def qehvi_pallas(samples: jax.Array,
                 cell_lower: jax.Array,
                 cell_upper: jax.Array,
                 X: jax.Array | None = None) -> jax.Array:
    """Pallas-backed equivalent of qEHVI4RandomForest.forward.

    samples:    (n_samples, batch, q, m) float32
    cell_lower: (num_cells, m)           float32
    cell_upper: (num_cells, m)           float32
    X:          ignored (the reference forward ignores X).
    Returns:    (batch,) float32
    """
    del X  # forward() ignores X; samples are a fixed buffer.
    n, b, q, m = samples.shape
    c = cell_lower.shape[0]
    nb = n * b

    # --- Cell (lane) tiling ---------------------------------------------------
    c128 = _round_up(max(c, 1), _OUT_LANES)
    tc = min(c128, _MAX_TC)
    c_pad = _round_up(c128, tc)
    n_ctiles = c_pad // tc

    # --- Row (sublane) tiling, sized from the per-chip VMEM budget ------------
    # Live (TM, 128) f32 blocks per chunk iteration: broadcast sample columns
    # (q*m) + chunk lengths (q*m) + DFS prefix chain (<= q*m) + broadcast
    # bound rows (2*m) + acc/area/total slack.
    vmem_cap = _vmem_capacity_bytes()
    bytes_per_row = _OUT_LANES * 4 * (3 * q * m + 2 * m + 8)
    tm_budget = max(8, ((vmem_cap // 3) // bytes_per_row) // 8 * 8)
    tm = min(_MAX_TM, tm_budget, _round_up(nb, 8))
    # Megacore: when the cell axis has a single tile, guarantee >= 2 steps on
    # the (parallel) row axis so both TensorCores get work on v7x.
    if n_ctiles == 1 and nb >= 16 and _round_up(nb, tm) // tm < 2:
        tm = _round_up((nb + 1) // 2, 8)
    nb_pad = _round_up(nb, tm)

    # --- Layout: rows = (sample, batch) pairs on sublanes, cells on lanes -----
    samples_flat = samples.reshape(nb, q * m).astype(jnp.float32)
    if nb_pad > nb:
        samples_flat = jnp.pad(samples_flat, ((0, nb_pad - nb), (0, 0)))
    lower_t = cell_lower.T.astype(jnp.float32)   # (m, C)
    upper_t = cell_upper.T.astype(jnp.float32)   # (m, C)
    if c_pad > c:
        # Padded cells use lower == upper == 0 so their clamped length is exactly 0.
        lower_t = jnp.pad(lower_t, ((0, 0), (0, c_pad - c)))
        upper_t = jnp.pad(upper_t, ((0, 0), (0, c_pad - c)))

    grid = (nb_pad // tm, n_ctiles)
    kernel = _make_ehvi_kernel(q, m, tc)

    partial = pl.pallas_call(
        kernel,
        out_shape=jax.ShapeDtypeStruct((nb_pad, n_ctiles * _OUT_LANES), jnp.float32),
        grid_spec=pltpu.PrefetchScalarGridSpec(
            num_scalar_prefetch=0,
            grid=grid,
            in_specs=[
                pl.BlockSpec((tm, q * m), lambda i, cc: (i, 0)),   # row tile of samples
                pl.BlockSpec((m, tc), lambda i, cc: (0, cc)),      # cell tile of lower
                pl.BlockSpec((m, tc), lambda i, cc: (0, cc)),      # cell tile of upper
            ],
            # Each (row tile, cell tile) writes its own 128-lane output slab ->
            # no cross-step accumulator, both grid axes can be "parallel".
            out_specs=pl.BlockSpec((tm, _OUT_LANES), lambda i, cc: (i, cc)),
        ),
        compiler_params=pltpu.CompilerParams(
            dimension_semantics=("parallel", "parallel"),
            vmem_limit_bytes=max(32 * 1024 * 1024,
                                 min(vmem_cap * 3 // 4, 112 * 1024 * 1024)),
        ),
    )(samples_flat, lower_t, upper_t)

    # Tiny glue reductions (match areas_per_segment.sum(dim=-1).mean(dim=0)).
    per_row = partial.sum(axis=-1)[:nb]
    return per_row.reshape(n, b).mean(axis=0)


def qehvi_reference(samples: np.ndarray,
                    cell_lower: np.ndarray,
                    cell_upper: np.ndarray) -> np.ndarray:
    """Pure NumPy transcription of _compute_ehvi for verification."""
    n, b, q, m = samples.shape
    c = cell_lower.shape[0]
    acc = np.zeros((n, b, c), dtype=np.float64)
    for i in range(1, q + 1):
        for combo in combinations(range(q), i):
            v = samples[..., list(combo), :].min(axis=-2)                # (N,B,m)
            overlap = np.minimum(v[:, :, None, :], cell_upper[None, None])
            lengths = np.clip(overlap - cell_lower[None, None], 0.0, None)
            acc += ((-1.0) ** (i + 1)) * lengths.prod(axis=-1)
    return acc.sum(axis=-1).mean(axis=0)


if __name__ == "__main__":
    key = jax.random.PRNGKey(0)
    k1, k2, k3, k4 = jax.random.split(key, 4)

    # Small deterministic problem: 8 MC samples, batch 2, q=3 candidates,
    # m=2 objectives, 4 hypercells in the non-dominated partitioning.
    n_samples, batch, q, m, n_cells = 8, 2, 3, 2, 4

    samples = jax.random.normal(k1, (n_samples, batch, q, m), dtype=jnp.float32)
    cell_lower = jax.random.normal(k2, (n_cells, m), dtype=jnp.float32) * 0.5 - 1.0
    cell_upper = cell_lower + jnp.abs(jax.random.normal(k3, (n_cells, m),
                                                        dtype=jnp.float32)) + 0.1
    # ref_point is only length-validated and folded into the partitioning bounds;
    # it does not enter the forward math, so it is not a kernel input.
    ref_point = jnp.full((m,), -1.0, dtype=jnp.float32)
    assert ref_point.shape[0] == m

    X = jax.random.normal(k4, (batch, q, 4), dtype=jnp.float32)  # ignored by forward

    out = qehvi_pallas(samples, cell_lower, cell_upper, X)
    out = jax.block_until_ready(out)

    ref = qehvi_reference(np.asarray(samples), np.asarray(cell_lower),
                          np.asarray(cell_upper))
    np.testing.assert_allclose(np.asarray(out), ref, rtol=1e-5, atol=1e-5)

    print("KERNEL_OK")
</pallas_src>

<mosaic_0001>
module attributes {stable_mosaic.version = 11 : i64} {
  func.func @kernel(%arg0: i32, %arg1: i32, %arg2: memref<8x6xf32, #tpu.memory_space<vmem>>, %arg3: memref<2x128xf32, #tpu.memory_space<vmem>>, %arg4: memref<2x128xf32, #tpu.memory_space<vmem>>, %arg5: memref<8x128xf32, #tpu.memory_space<vmem>>) attributes {dimension_semantics = [#tpu.dimension_semantics<parallel>, #tpu.dimension_semantics<parallel>], iteration_bounds = array<i64: 2, 1>, scalar_prefetch = 0 : i64, scratch_operands = 0 : i64, tpu.core_type = #tpu.core_type<tc>, window_params = [{transform_indices = @transform_0, window_bounds = array<i64: 8, 6>}, {transform_indices = @transform_1, window_bounds = array<i64: 2, 128>}, {transform_indices = @transform_2, window_bounds = array<i64: 2, 128>}, {transform_indices = @transform_3, window_bounds = array<i64: 8, 128>}]} {
    %c0 = arith.constant 0 : index
    %c0_0 = arith.constant 0 : index
    %0 = vector.load %arg2[%c0, %c0_0] : memref<8x6xf32, #tpu.memory_space<vmem>>, vector<8x1xf32>
    %1 = vector.shape_cast %0 : vector<8x1xf32> to vector<8x1xf32>
    %2 = vector.broadcast %1 : vector<8x1xf32> to vector<8x128xf32>
    %c0_1 = arith.constant 0 : index
    %c1 = arith.constant 1 : index
    %3 = vector.load %arg2[%c0_1, %c1] : memref<8x6xf32, #tpu.memory_space<vmem>>, vector<8x1xf32>
    %4 = vector.shape_cast %3 : vector<8x1xf32> to vector<8x1xf32>
    %5 = vector.broadcast %4 : vector<8x1xf32> to vector<8x128xf32>
    %c0_2 = arith.constant 0 : index
    %c2 = arith.constant 2 : index
    %6 = vector.load %arg2[%c0_2, %c2] : memref<8x6xf32, #tpu.memory_space<vmem>>, vector<8x1xf32>
    %7 = vector.shape_cast %6 : vector<8x1xf32> to vector<8x1xf32>
    %8 = vector.broadcast %7 : vector<8x1xf32> to vector<8x128xf32>
    %c0_3 = arith.constant 0 : index
    %c3 = arith.constant 3 : index
    %9 = vector.load %arg2[%c0_3, %c3] : memref<8x6xf32, #tpu.memory_space<vmem>>, vector<8x1xf32>
    %10 = vector.shape_cast %9 : vector<8x1xf32> to vector<8x1xf32>
    %11 = vector.broadcast %10 : vector<8x1xf32> to vector<8x128xf32>
    %c0_4 = arith.constant 0 : index
    %c4 = arith.constant 4 : index
    %12 = vector.load %arg2[%c0_4, %c4] : memref<8x6xf32, #tpu.memory_space<vmem>>, vector<8x1xf32>
    %13 = vector.shape_cast %12 : vector<8x1xf32> to vector<8x1xf32>
    %14 = vector.broadcast %13 : vector<8x1xf32> to vector<8x128xf32>
    %c0_5 = arith.constant 0 : index
    %c5 = arith.constant 5 : index
    %15 = vector.load %arg2[%c0_5, %c5] : memref<8x6xf32, #tpu.memory_space<vmem>>, vector<8x1xf32>
    %16 = vector.shape_cast %15 : vector<8x1xf32> to vector<8x1xf32>
    %17 = vector.broadcast %16 : vector<8x1xf32> to vector<8x128xf32>
    %c0_6 = arith.constant 0 : index
    %c0_7 = arith.constant 0 : index
    %18 = vector.load %arg4[%c0_6, %c0_7] : memref<2x128xf32, #tpu.memory_space<vmem>>, vector<1x128xf32>
    %19 = vector.shape_cast %18 : vector<1x128xf32> to vector<1x128xf32>
    %20 = vector.broadcast %19 : vector<1x128xf32> to vector<8x128xf32>
    %c1_8 = arith.constant 1 : index
    %c0_9 = arith.constant 0 : index
    %21 = vector.load %arg4[%c1_8, %c0_9] : memref<2x128xf32, #tpu.memory_space<vmem>>, vector<1x128xf32>
    %22 = vector.shape_cast %21 : vector<1x128xf32> to vector<1x128xf32>
    %23 = vector.broadcast %22 : vector<1x128xf32> to vector<8x128xf32>
    %c0_10 = arith.constant 0 : index
    %c0_11 = arith.constant 0 : index
    %24 = vector.load %arg3[%c0_10, %c0_11] : memref<2x128xf32, #tpu.memory_space<vmem>>, vector<1x128xf32>
    %25 = vector.shape_cast %24 : vector<1x128xf32> to vector<1x128xf32>
    %26 = vector.broadcast %25 : vector<1x128xf32> to vector<8x128xf32>
    %c1_12 = arith.constant 1 : index
    %c0_13 = arith.constant 0 : index
    %27 = vector.load %arg3[%c1_12, %c0_13] : memref<2x128xf32, #tpu.memory_space<vmem>>, vector<1x128xf32>
    %28 = vector.shape_cast %27 : vector<1x128xf32> to vector<1x128xf32>
    %29 = vector.broadcast %28 : vector<1x128xf32> to vector<8x128xf32>
    %30 = arith.minimumf %2, %20 : vector<8x128xf32>
    %31 = arith.subf %30, %26 : vector<8x128xf32>
    %cst = arith.constant 0.000000e+00 : f32
    %32 = vector.broadcast %cst : f32 to vector<8x128xf32>
    %33 = arith.maximumf %31, %32 : vector<8x128xf32>
    %34 = arith.minimumf %5, %23 : vector<8x128xf32>
    %35 = arith.subf %34, %29 : vector<8x128xf32>
    %cst_14 = arith.constant 0.000000e+00 : f32
    %36 = vector.broadcast %cst_14 : f32 to vector<8x128xf32>
    %37 = arith.maximumf %35, %36 : vector<8x128xf32>
    %38 = arith.minimumf %8, %20 : vector<8x128xf32>
    %39 = arith.subf %38, %26 : vector<8x128xf32>
    %cst_15 = arith.constant 0.000000e+00 : f32
    %40 = vector.broadcast %cst_15 : f32 to vector<8x128xf32>
    %41 = arith.maximumf %39, %40 : vector<8x128xf32>
    %42 = arith.minimumf %11, %23 : vector<8x128xf32>
    %43 = arith.subf %42, %29 : vector<8x128xf32>
    %cst_16 = arith.constant 0.000000e+00 : f32
    %44 = vector.broadcast %cst_16 : f32 to vector<8x128xf32>
    %45 = arith.maximumf %43, %44 : vector<8x128xf32>
    %46 = arith.minimumf %14, %20 : vector<8x128xf32>
    %47 = arith.subf %46, %26 : vector<8x128xf32>
    %cst_17 = arith.constant 0.000000e+00 : f32
    %48 = vector.broadcast %cst_17 : f32 to vector<8x128xf32>
    %49 = arith.maximumf %47, %48 : vector<8x128xf32>
    %50 = arith.minimumf %17, %23 : vector<8x128xf32>
    %51 = arith.subf %50, %29 : vector<8x128xf32>
    %cst_18 = arith.constant 0.000000e+00 : f32
    %52 = vector.broadcast %cst_18 : f32 to vector<8x128xf32>
    %53 = arith.maximumf %51, %52 : vector<8x128xf32>
    %54 = arith.mulf %33, %37 : vector<8x128xf32>
    %55 = arith.minimumf %33, %41 : vector<8x128xf32>
    %56 = arith.minimumf %37, %45 : vector<8x128xf32>
    %57 = arith.mulf %55, %56 : vector<8x128xf32>
    %58 = arith.subf %54, %57 : vector<8x128xf32>
    %59 = arith.minimumf %55, %49 : vector<8x128xf32>
    %60 = arith.minimumf %56, %53 : vector<8x128xf32>
    %61 = arith.mulf %59, %60 : vector<8x128xf32>
    %62 = arith.addf %58, %61 : vector<8x128xf32>
    %63 = arith.minimumf %33, %49 : vector<8x128xf32>
    %64 = arith.minimumf %37, %53 : vector<8x128xf32>
    %65 = arith.mulf %63, %64 : vector<8x128xf32>
    %66 = arith.subf %62, %65 : vector<8x128xf32>
    %67 = arith.mulf %41, %45 : vector<8x128xf32>
    %68 = arith.addf %66, %67 : vector<8x128xf32>
    %69 = arith.minimumf %41, %49 : vector<8x128xf32>
    %70 = arith.minimumf %45, %53 : vector<8x128xf32>
    %71 = arith.mulf %69, %70 : vector<8x128xf32>
    %72 = arith.subf %68, %71 : vector<8x128xf32>
    %73 = arith.mulf %49, %53 : vector<8x128xf32>
    %74 = arith.addf %72, %73 : vector<8x128xf32>
    %c0_19 = arith.constant 0 : index
    %c0_20 = arith.constant 0 : index
    %75 = vector.load %arg5[%c0_19, %c0_20] : memref<8x128xf32, #tpu.memory_space<vmem>>, vector<8x128xf32>
    tpu.vector_store %arg5[%c0_19, %c0_20], %74 {strides = array<i32>} : memref<8x128xf32, #tpu.memory_space<vmem>>, vector<8x128xf32>,
    return
  }
  func.func @transform_0(%arg0: i32, %arg1: i32) -> (i32, i32) {
    %c0_i32 = arith.constant 0 : i32
    %c0_i32_0 = arith.constant 0 : i32
    return %arg0, %c0_i32 : i32, i32
  }
  func.func @transform_1(%arg0: i32, %arg1: i32) -> (i32, i32) {
    %c0_i32 = arith.constant 0 : i32
    %c0_i32_0 = arith.constant 0 : i32
    return %c0_i32, %arg1 : i32, i32
  }
  func.func @transform_2(%arg0: i32, %arg1: i32) -> (i32, i32) {
    %c0_i32 = arith.constant 0 : i32
    %c0_i32_0 = arith.constant 0 : i32
    return %c0_i32, %arg1 : i32, i32
  }
  func.func @transform_3(%arg0: i32, %arg1: i32) -> (i32, i32) {
    %c0_i32 = arith.constant 0 : i32
    return %arg0, %arg1 : i32, i32
  }
}

</mosaic_0001>

<bundles_post_ra>
// kernel: tpu_custom_call.1
= control target key start
LH: loop header
LB: loop body
LE: loop exit
PB: predicated region body
PF: predicated region fallthrough
CT: control target
= control target key end

     0   :  { %8 = vsyncpa [#allocation3], 0  ;;  %s713_s0 = inlined_call_operand.vmem [shape: f32[16,6], index: 0, kind: input, shape index: {}]   ;;  %s714_s1 = inlined_call_operand.vmem [shape: f32[2,128], index: 1, kind: input, shape index: {}]   ;;  %s715_s2 = inlined_call_operand.vmem [shape: f32[2,128], index: 2, kind: input, shape index: {}]   ;;  %s716_s3 = inlined_call_operand.hbm [shape: f32[16,128], index: 3, kind: output, shape index: {}]  }
   0x1   :  { %10 = vsyncpa [#allocation3 + $0x1], 0  ;;  %s602_s12 = smov 0   ;;  %s604_s13 = smov 0  }
   0x2   :  { %s606_s14 = smov 0   ;;  %s608_s15 = smov 0  }
   0x3   :  { %s610_s16 = smov 0   ;;  %s612_s17 = smov 0  }
   0x4 LB: > { %s413_s18 = sadd.s32 4294967295, %s573_s17   ;;  %s414_s19 = sadd.s32 4294967294, %s573_s17   ;;  %s573_s17 = sphi %s612_s17, %s16_s17   ;;  %s569_s16 = sphi %s610_s16, %s723_s16   ;;  %s565_s15 = sphi %s608_s15, %s722_s15   ;;  %s561_s14 = sphi %s606_s14, %s721_s14   ;;  %s557_s13 = sphi %s604_s13, %s720_s13   ;;  %s553_s12 = sphi %s602_s12, %s719_s12  }
   0x5   : > { %s28_s20 = sadd.s32 1, %s569_s16  ;;  %s115_s21 = sadd.s32 1, %s561_s14 }
   0x6   : > { %p30_p0 = scmp.ge.s32.totalorder %s28_s20, 2  ;;  %p125_p1 = scmp.ne.s32.totalorder %s561_s14, %s557_s13 }
   0x7   : > { %p126_p2 = scmp.eq.s32.totalorder %s413_s18, 1  ;;  %p131_p3 = scmp.ne.s32.totalorder %s557_s13, %s553_s12 }
   0x8   : > { %s725_s20 = smov (%p30_p0, %s28_s20), 0  ;;  %p132_p5 = scmp.eq.s32.totalorder %s414_s19, 1 }
   0x9   : > { %p642_p4 = por %p126_p2, %p125_p1  ;;  %s110_s23 = ssub.s32 %s569_s16, %s725_s20 }
   0xa   : > { %p419_p6 = scmp.ge.s32.totalorder %s573_s17, 1  ;;  %p113_p7 = scmp.eq.s32.totalorder %s110_s23, 0 }
   0xb   : > { %p649_p8 = por %p132_p5, %p131_p3  ;;  %p171_p9 = scmp.lt.s32.totalorder %s573_s17, 3 }
   0xc   : > { %s655_s25 = scalar_select %p113_p7, %s561_s14, %s115_s21  }
   0xd   : > { %p172_p10 = pnand %p419_p6, %p171_p9 }
   0xe   : > { %p202_p11 = scmp.lt.s32.totalorder (!%p172_p10), %s565_s15, 1  ;;  %s199_s18 = sand.u32 (!%p172_p10), 1, %s557_s13  }
   0xf   : > { %175 = sbr.rel (%p172_p10) target bundleno = 192 (0xc0), region = 32  ;;  %s420_s19 = sshll.u32 (!%p172_p10), %s199_s18, 3 }
  0x10   : > { %s427_s21 = sshll.u32 (!%p172_p10), %s565_s15, 7  ;;  %s201_s23 = scalar_lea.vmem (!%p172_p10), [#allocation2], %s420_s19 }
  0x11   : > { %s313_s29 = scalar_lea.hbm (!%p172_p10), %s716_s3, %s427_s21  ;;  %s581_s5 = smov (!%p172_p10), [#allocation2]  }
  0x12   : > { %s501_s6 = sshll.u32 (!%p172_p10), %s581_s5, 4  ;;  %s502_s6 = int_to_ptr.vmem [resolvable:$false] %s501_s6 }
  0x14   : > { %v575_v0 = vmov 2   ;;  %v576_v1 = vmov 0   ;;  %s203_s26 = scalar_select %p202_p11, %s565_s15, 1  ;;  %v577_v3 = vmov 3   ;;  %v578_v4 = vmov 1  }
  0x15   : > { %493 = vset.pattern.permute.xlu1 %v575_v0  ;;  %491 = vset.pattern.permute.xlu0 %v576_v1  ;;  %v579_v5 = vmov 4   ;;  %v580_v6 = vmov 5   ;;  %v422_v7 = vld [vmem:[%s715_s2] ss:$0 sm:$0xff]  ;;  %v423_v13 = vld [vmem:[%s715_s2 + $0x1] ss:$0 sm:$0xff] }
  0x16   : > { %s421_s27 = sshll.u32 %s203_s26, 3  ;;  %v424_v12 = vld [vmem:[%s714_s1] ss:$0 sm:$0xff]  ;;  %v425_v16 = vld [vmem:[%s714_s1 + $0x1] ss:$0 sm:$0xff]  ;;  %s315_s26 = sshll.u32 %s201_s23, 4  ;;  %s316_s26 = int_to_ptr.vmem [resolvable:$true] %s315_s26 }
  0x17   : > { %s205_s30 = scalar_lea.vmem %s713_s0, %s421_s27  ;;  %s497_s4 = scalar_lea.vmem %s316_s26, 128 }
  0x18   : > { %v214_v2 = vld [vmem:[%s205_s30] sm:$0xff]  ;;  %s301_s30 = scalar_lea.sflag [#allocation3], %s199_s18  ;;  %p498_p12 = scmp.ne.s32.totalorder %s316_s26, %s497_s4 }
  0x19   : > { %225 = vperm.xlu1 %493, %v214_v2   ;;  %217 = vperm.xlu0 %491, %v214_v2   ;;  %s503_s15 = scalar_lea.vmem %s502_s6, 256  ;;  %p504_p1 = scmp.lt.s32.totalorder %s316_s26, %s502_s6 }
  0x1a   : > { %p499_p13 = pnand %p498_p12, %p642_p4  ;;  %p505_p2 = scmp.lt.s32.totalorder %s503_s15, %s497_s4 }
  0x1c   : > { %p500_p0 = pneg %p499_p13  ;;  %p506_p3 = por %p505_p2, %p504_p1 }
  0x1d   : > { %494 = vset.pattern.permute.xlu1 %v577_v3  ;;  %492 = vset.pattern.permute.xlu0 %v578_v4 }
  0x1e   : > { %229 = vperm.xlu1 %494, %v214_v2   ;;  %221 = vperm.xlu0 %492, %v214_v2   ;;  %p507_p5 = pnand %p506_p3, %p500_p0 }
  0x22   : > { %495 = vset.pattern.permute.xlu1 %v579_v5  ;;  %496 = vset.pattern.permute.xlu0 %v580_v6 }
  0x23   : > { %233 = vperm.xlu1 %495, %v214_v2   ;;  %237 = vperm.xlu0 %496, %v214_v2  }
  0x94   : > { %v226_v8 = vpop.permute.xlu1 %225  ;;  %v218_v9 = vpop.permute.xlu0 %217 }
  0x95   : > { %v266_v10 = vmin.f32 %v226_v8, %v422_v7  ;;  %v260_v11 = vmin.f32 %v218_v9, %v422_v7 }
  0x97   : > { %v267_v14 = vsub.f32 %v266_v10, %v424_v12  ;;  %v261_v15 = vsub.f32 %v260_v11, %v424_v12 }
  0x99   : > { %v230_v17 = vpop.permute.xlu1 %229  ;;  %v222_v18 = vpop.permute.xlu0 %221  ;;  %v268_v23 = vmax.f32 %v267_v14, 0.0  ;;  %v262_v24 = vmax.f32 %v261_v15, 0.0 }
  0x9a   : > { %v269_v19 = vmin.f32 %v230_v17, %v423_v13  ;;  %v263_v20 = vmin.f32 %v222_v18, %v423_v13 }
  0x9b   : > { %v279_v32 = vmin.f32 %v262_v24, %v268_v23 }
  0x9c   : > { %v270_v21 = vsub.f32 %v269_v19, %v425_v16  ;;  %v264_v22 = vsub.f32 %v263_v20, %v425_v16 }
  0x9e   : > { %v271_v25 = vmax.f32 %v270_v21, 0.0  ;;  %v265_v26 = vmax.f32 %v264_v22, 0.0  ;;  %v234_v27 = vpop.permute.xlu1 %233  ;;  %v238_v28 = vpop.permute.xlu0 %237 }
  0x9f   : > { %v272_v29 = vmin.f32 %v234_v27, %v422_v7  ;;  %v275_v30 = vmin.f32 %v238_v28, %v423_v13 }
  0xa0   : > { %v280_v31 = vmin.f32 %v265_v26, %v271_v25  ;;  %v278_v38 = vmul.f32 %v265_v26, %v262_v24  ;;  %v291_v49 = vmul.f32 %v271_v25, %v268_v23 }
  0xa1   : > { %v273_v33 = vsub.f32 %v272_v29, %v424_v12  ;;  %v276_v34 = vsub.f32 %v275_v30, %v425_v16 }
  0xa2   : > { %v281_v35 = vmul.f32 %v280_v31, %v279_v32 }
  0xa3   : > { %v274_v36 = vmax.f32 %v273_v33, 0.0  ;;  %v277_v37 = vmax.f32 %v276_v34, 0.0 }
  0xa4   : > { %v282_v43 = vsub.f32 %v278_v38, %v281_v35 }
  0xa5   : > { %v283_v39 = vmin.f32 %v279_v32, %v274_v36  ;;  %v287_v40 = vmin.f32 %v262_v24, %v274_v36  ;;  %v284_v41 = vmin.f32 %v280_v31, %v277_v37  ;;  %v288_v42 = vmin.f32 %v265_v26, %v277_v37 }
  0xa6   : > { %v293_v45 = vmin.f32 %v268_v23, %v274_v36  ;;  %v294_v47 = vmin.f32 %v271_v25, %v277_v37  ;;  %v297_v54 = vmul.f32 %v277_v37, %v274_v36 }
  0xa7   : > { %v285_v44 = vmul.f32 %v284_v41, %v283_v39  ;;  %v289_v46 = vmul.f32 %v288_v42, %v287_v40 }
  0xa8   : > { %v295_v52 = vmul.f32 %v294_v47, %v293_v45 }
  0xa9   : > { %v286_v48 = vadd.f32 %v285_v44, %v282_v43 }
  0xab   : > { %v290_v50 = vsub.f32 %v286_v48, %v289_v46 }
  0xad   : > { %v292_v51 = vadd.f32 %v291_v49, %v290_v50 }
  0xaf   : > { %v296_v53 = vsub.f32 %v292_v51, %v295_v52 }
  0xb1   : > { %v298_v55 = vadd.f32 %v297_v54, %v296_v53 }
  0xb3   : > { %299 = vst [vmem:[%s201_s23] sm:$0xff] %v298_v55 }
  0xb4   : > { %510 = shalt.err (!%p507_p5)
}
  0xb5   : > { %s511_s7 = scalar_lea.hbm %s313_s29, 128  ;;  %s515_s10 = scalar_lea.hbm %s716_s3, 256 }
  0xb6   : > { %p512_p6 = scmp.ne.s32.totalorder %s313_s29, %s511_s7  ;;  %p516_p10 = scmp.lt.s32.totalorder %s313_s29, %s716_s3 }
  0xb7   : > { %p517_p11 = scmp.lt.s32.totalorder %s515_s10, %s511_s7 }
  0xb8   : > { %p513_p7 = pnand %p512_p6, %p642_p4 }
  0xb9   : > { %p518_p12 = por %p517_p11, %p516_p10 }
  0xba   : > { %p514_p9 = pneg %p513_p7 }
  0xbc   : > { %p519_p13 = pnand %p518_p12, %p514_p9 }
  0xbe   : > { %522 = shalt.err (!%p519_p13)
}
  0xbf   : > { %430 = dma.vmem_to_hbm [thread:$0]  (%p642_p4), %s316_s26, 128, %s313_s29, %s301_s30  }
  0xc0 PF: > { %p436_p0 = scmp.ge.s32.totalorder %s573_s17, 2  ;;  %s327_s19 = sand.u32 1, %s553_s12  }
  0xc1   : > { %s328_s21 = scalar_lea.sflag [#allocation3], %s327_s19 }
  0xc2   : > { %p433_p1 = pnand %p436_p0, %p649_p8 }
  0xc4   : > { %p434_p2 = pneg %p433_p1 }
  0xc6   : > { %548 = dma.done.wait (%p434_p2), %s328_s21, 128  }
  0xc7   : > { %550 = vsyncadd (%p434_p2), %s328_s21, 4294967168  ;;  %s16_s17 = sadd.s32 1, %s573_s17   ;;  %s719_s12 = smov %s557_s13 }
  0xc8   : > { %p13_p3 = scmp.ge.s32.totalorder %s16_s17, 4   ;;  %s720_s13 = smov %s561_s14 }
  0xc9   : > { %s721_s14 = smov %s655_s25  ;;  %s722_s15 = smov %s569_s16 }
  0xca   : > { %s723_s16 = smov %s725_s20  ;;  %15 = sbr.rel (!%p13_p3) target bundleno = 4 (0x4), region = 73 }
  0xcf   :  { %333 = vsyncpa [#allocation3], 1 }
  0xd0   :  { %335 = vsyncpa [#allocation3 + $0x1], 1 }

</bundles_post_ra>
